<compile_context>
chip_gen: v7x
topology: tpu7x:2x2x1
jax: 0.10.0
libtpu: 0.0.40
codegen_flags: <defaults>
</compile_context>

<pallas_src>
import math

import jax
import jax.numpy as jnp
from jax.experimental import pallas as pl
from jax.experimental.pallas import tpu as pltpu


def _build_embedding(num_steps: int, half_dim: int,
                     dtype=jnp.float32) -> jnp.ndarray:
    """Matches DiffusionEmbedding._build_embedding: (num_steps, 2*half_dim)."""
    steps = jnp.arange(num_steps, dtype=jnp.float32)[:, None]              # (T, 1)
    freqs = 10.0 ** (jnp.arange(half_dim, dtype=jnp.float32)
                     / (half_dim - 1) * 4.0)[None, :]                      # (1, half)
    table = steps * freqs                                                  # (T, half)
    out = jnp.concatenate([jnp.sin(table), jnp.cos(table)], axis=1)        # (T, 2*half)
    return out.astype(dtype)


def _diffusion_embedding_kernel(step_ref,    # VMEM (B, 1) int32
                                table_ref,   # VMEM (T, E) f32 or bf16
                                w1_ref,      # VMEM (E, P) f32 or bf16
                                b1_ref,      # VMEM (1, P) f32
                                w2_ref,      # VMEM (P, P) f32 or bf16
                                b2_ref,      # VMEM (1, P) f32
                                o_ref):      # VMEM (B, P) f32
    B = o_ref.shape[0]
    T = table_ref.shape[0]

    # One-hot MXU gather: (B, T) @ (T, E) -> (B, E).  Exact: weights are 0/1,
    # accumulation is f32.  Rides the otherwise-idle MXU instead of the scalar
    # slot; fully vectorized index compare on the VPU.
    steps = step_ref[...]                                                  # (B, 1)
    iota = jax.lax.broadcasted_iota(jnp.int32, (B, T), 1)                  # (B, T)
    onehot = (iota == steps).astype(table_ref.dtype)                       # (B, T)
    x = jnp.dot(onehot, table_ref[...],
                preferred_element_type=jnp.float32)                        # (B, E) f32

    w_dtype = w1_ref.dtype
    h = jnp.dot(x.astype(w_dtype), w1_ref[...],
                preferred_element_type=jnp.float32) + b1_ref[...]
    h = h * jax.nn.sigmoid(h)                                              # SiLU (f32)
    y = jnp.dot(h.astype(w_dtype), w2_ref[...],
                preferred_element_type=jnp.float32) + b2_ref[...]
    o_ref[...] = (y * jax.nn.sigmoid(y)).astype(o_ref.dtype)               # SiLU (f32)


def diffusion_embedding_forward(diffusion_step, table, w1, b1, w2, b2):
    """Fused DiffusionEmbedding forward.

    diffusion_step: (B,) integer timestep indices.
    table:          (num_steps, E) sinusoidal table (f32 or bf16).
    w1: (E, P), w2: (P, P)  -- transposed nn.Linear weights; f32 or bf16
                               (bf16 is MXU-native on v5e/v6e/v7x).
    b1, b2: (1, P) f32      -- pre-reshaped once at init (not per call).
    Returns (B, P) f32.

    NOTE: this op is launch-latency bound; stack as many timesteps / batch rows
    as possible into one call (B >= 128 fills the MXU).  The wrapper pads B up
    to a multiple of 8 (dummy step 0) and slices the result, so ragged B is
    fine but wasteful.  For very large stacked B (>= 256) on v7x, a parallel
    B-tiled grid would engage the second TensorCore — not needed at these
    sizes.
    """
    B = diffusion_step.shape[0]
    T, E = table.shape
    P = w1.shape[1]

    # Clamp (VMEM refs have no runtime bounds check) and pad B to a multiple
    # of 8 (>= 8) so the (B, P) output is full-sublane, unmasked stores.
    steps = jnp.clip(diffusion_step.astype(jnp.int32), 0, T - 1)
    B_pad = max(8, -(-B // 8) * 8)
    if B_pad != B:
        steps = jnp.pad(steps, (0, B_pad - B))
    steps = steps.reshape(B_pad, 1)

    vmem = pl.BlockSpec(memory_space=pltpu.MemorySpace.VMEM)

    wbytes = jnp.dtype(w1.dtype).itemsize
    tbytes = jnp.dtype(table.dtype).itemsize
    cost = pl.CostEstimate(
        flops=(2 * B_pad * T * E            # one-hot gather matmul
               + 2 * B_pad * E * P          # projection1
               + 2 * B_pad * P * P          # projection2
               + 6 * B_pad * P),            # biases + SiLU muls
        transcendentals=2 * B_pad * P,      # two sigmoids
        bytes_accessed=(tbytes * T * E
                        + wbytes * (E * P + P * P)
                        + 4 * (2 * P + B_pad * P)
                        + 4 * B_pad),
    )

    out = pl.pallas_call(
        _diffusion_embedding_kernel,
        out_shape=jax.ShapeDtypeStruct((B_pad, P), jnp.float32),
        in_specs=[vmem] * 6,
        out_specs=vmem,
        cost_estimate=cost,
    )(steps, table, w1, b1, w2, b2)
    return out[:B]


if __name__ == "__main__":
    num_steps = 50
    embedding_dim = 128        # module default (defines E)
    projection_dim = 128
    batch = 5                  # ragged on purpose -> exercises pad-to-8 + slice

    # Deterministic parameter init (mimics nn.Linear uniform(-1/sqrt(in), 1/sqrt(in))).
    key = jax.random.PRNGKey(0)
    k1, k2, k3, k4, k5 = jax.random.split(key, 5)
    bound1 = 1.0 / math.sqrt(embedding_dim)
    bound2 = 1.0 / math.sqrt(projection_dim)
    w1 = jax.random.uniform(k1, (embedding_dim, projection_dim), jnp.float32,
                            -bound1, bound1)
    b1 = jax.random.uniform(k2, (1, projection_dim), jnp.float32, -bound1, bound1)
    w2 = jax.random.uniform(k3, (projection_dim, projection_dim), jnp.float32,
                            -bound2, bound2)
    b2 = jax.random.uniform(k4, (1, projection_dim), jnp.float32, -bound2, bound2)

    embedding = _build_embedding(num_steps, embedding_dim // 2)            # (50, 128) f32
    diffusion_step = jax.random.randint(k5, (batch,), 0, num_steps, jnp.int32)

    def reference(table_, w1_, w2_, cast_dtype):
        x = table_[diffusion_step].astype(jnp.float32)
        h = jnp.dot(x.astype(cast_dtype), w1_,
                    preferred_element_type=jnp.float32) + b1
        h = h * jax.nn.sigmoid(h)
        y = jnp.dot(h.astype(cast_dtype), w2_,
                    preferred_element_type=jnp.float32) + b2
        return y * jax.nn.sigmoid(y)

    # --- f32 weights + f32 table: exact PyTorch-f32 semantics ------------------
    out = diffusion_embedding_forward(diffusion_step, embedding, w1, b1, w2, b2)
    out = jax.block_until_ready(out)
    ref_f32 = reference(embedding, w1, w2, jnp.float32)
    assert out.shape == (batch, projection_dim)
    assert jnp.allclose(out, ref_f32, atol=1e-5, rtol=1e-5)

    # --- bf16 weights + bf16 table: halves weight/table DMA on v5e/v6e/v7x -----
    emb_bf = embedding.astype(jnp.bfloat16)
    w1_bf, w2_bf = w1.astype(jnp.bfloat16), w2.astype(jnp.bfloat16)
    out_bf = diffusion_embedding_forward(diffusion_step, emb_bf,
                                         w1_bf, b1, w2_bf, b2)
    out_bf = jax.block_until_ready(out_bf)
    ref_bf = reference(emb_bf, w1_bf, w2_bf, jnp.bfloat16)
    assert jnp.allclose(out_bf, ref_bf, atol=1e-2, rtol=1e-2)

    print("KERNEL_OK")
</pallas_src>

<mosaic_0001>
module attributes {stable_mosaic.version = 11 : i64} {
  func.func @_diffusion_embedding_kernel(%arg0: memref<8x1xi32, #tpu.memory_space<vmem>>, %arg1: memref<50x128xf32, #tpu.memory_space<vmem>>, %arg2: memref<128x128xf32, #tpu.memory_space<vmem>>, %arg3: memref<1x128xf32, #tpu.memory_space<vmem>>, %arg4: memref<128x128xf32, #tpu.memory_space<vmem>>, %arg5: memref<1x128xf32, #tpu.memory_space<vmem>>, %arg6: memref<8x128xf32, #tpu.memory_space<vmem>>) attributes {dimension_semantics = [], scalar_prefetch = 0 : i64, scratch_operands = 0 : i64, tpu.core_type = #tpu.core_type<tc>} {
    %c0 = arith.constant 0 : index
    %c0_0 = arith.constant 0 : index
    %0 = vector.load %arg0[%c0, %c0_0] : memref<8x1xi32, #tpu.memory_space<vmem>>, vector<8x1xi32>
    %1 = tpu.iota {dimensions = array<i32: 1>} : vector<8x50xi32>
    %2 = vector.broadcast %0 : vector<8x1xi32> to vector<8x50xi32>
    %3 = arith.cmpi eq, %1, %2 : vector<8x50xi32>
    %4 = arith.extui %3 : vector<8x50xi1> to vector<8x50xi32>
    %5 = arith.sitofp %4 : vector<8x50xi32> to vector<8x50xf32>
    %c0_1 = arith.constant 0 : index
    %c0_2 = arith.constant 0 : index
    %6 = vector.load %arg1[%c0_1, %c0_2] : memref<50x128xf32, #tpu.memory_space<vmem>>, vector<50x128xf32>
    %cst = arith.constant dense<0.000000e+00> : vector<8x128xf32>
    %7 = tpu.matmul %5, %6, %cst {dimension_numbers = #tpu.dot_dimension_numbers<[1], [0], [0], [1], [0, 0, 1, 1], [], []>} : vector<8x50xf32>, vector<50x128xf32>, vector<8x128xf32> -> vector<8x128xf32>
    %c0_3 = arith.constant 0 : index
    %c0_4 = arith.constant 0 : index
    %8 = vector.load %arg2[%c0_3, %c0_4] : memref<128x128xf32, #tpu.memory_space<vmem>>, vector<128x128xf32>
    %cst_5 = arith.constant dense<0.000000e+00> : vector<8x128xf32>
    %9 = tpu.matmul %7, %8, %cst_5 {dimension_numbers = #tpu.dot_dimension_numbers<[1], [0], [0], [1], [0, 0, 1, 1], [], []>} : vector<8x128xf32>, vector<128x128xf32>, vector<8x128xf32> -> vector<8x128xf32>
    %c0_6 = arith.constant 0 : index
    %c0_7 = arith.constant 0 : index
    %10 = vector.load %arg3[%c0_6, %c0_7] : memref<1x128xf32, #tpu.memory_space<vmem>>, vector<1x128xf32>
    %11 = vector.broadcast %10 : vector<1x128xf32> to vector<8x128xf32>
    %12 = arith.addf %9, %11 : vector<8x128xf32>
    %13 = arith.negf %12 : vector<8x128xf32>
    %14 = math.exp %13 : vector<8x128xf32>
    %cst_8 = arith.constant 1.000000e+00 : f32
    %15 = vector.broadcast %cst_8 : f32 to vector<8x128xf32>
    %16 = arith.addf %15, %14 : vector<8x128xf32>
    %17 = arith.divf %15, %16 : vector<8x128xf32>
    %18 = arith.mulf %12, %17 : vector<8x128xf32>
    %c0_9 = arith.constant 0 : index
    %c0_10 = arith.constant 0 : index
    %19 = vector.load %arg4[%c0_9, %c0_10] : memref<128x128xf32, #tpu.memory_space<vmem>>, vector<128x128xf32>
    %cst_11 = arith.constant dense<0.000000e+00> : vector<8x128xf32>
    %20 = tpu.matmul %18, %19, %cst_11 {dimension_numbers = #tpu.dot_dimension_numbers<[1], [0], [0], [1], [0, 0, 1, 1], [], []>} : vector<8x128xf32>, vector<128x128xf32>, vector<8x128xf32> -> vector<8x128xf32>
    %c0_12 = arith.constant 0 : index
    %c0_13 = arith.constant 0 : index
    %21 = vector.load %arg5[%c0_12, %c0_13] : memref<1x128xf32, #tpu.memory_space<vmem>>, vector<1x128xf32>
    %22 = vector.broadcast %21 : vector<1x128xf32> to vector<8x128xf32>
    %23 = arith.addf %20, %22 : vector<8x128xf32>
    %24 = arith.negf %23 : vector<8x128xf32>
    %25 = math.exp %24 : vector<8x128xf32>
    %cst_14 = arith.constant 1.000000e+00 : f32
    %26 = vector.broadcast %cst_14 : f32 to vector<8x128xf32>
    %27 = arith.addf %26, %25 : vector<8x128xf32>
    %28 = arith.divf %26, %27 : vector<8x128xf32>
    %29 = arith.mulf %23, %28 : vector<8x128xf32>
    %c0_15 = arith.constant 0 : index
    %c0_16 = arith.constant 0 : index
    %30 = vector.load %arg6[%c0_15, %c0_16] : memref<8x128xf32, #tpu.memory_space<vmem>>, vector<8x128xf32>
    tpu.vector_store %arg6[%c0_15, %c0_16], %29 {strides = array<i32>} : memref<8x128xf32, #tpu.memory_space<vmem>>, vector<8x128xf32>,
    return
  }
}

</mosaic_0001>

<bundles_post_ra>
// kernel: tpu_custom_call.1
= control target key start
LH: loop header
LB: loop body
LE: loop exit
PB: predicated region body
PF: predicated region fallthrough
CT: control target
= control target key end

     0   :  { %11 = vsyncpa [#allocation3], 0  ;;  %s827_s0 = inlined_call_operand.vmem [shape: s32[8,1], index: 0, kind: input, shape index: {}]   ;;  %s828_s1 = inlined_call_operand.hbm [shape: f32[50,128], index: 1, kind: input, shape index: {}]   ;;  %s829_s2 = inlined_call_operand.hbm [shape: f32[128,128], index: 2, kind: input, shape index: {}]   ;;  %s830_s3 = inlined_call_operand.vmem [shape: f32[1,128], index: 3, kind: input, shape index: {}]   ;;  %s831_s4 = inlined_call_operand.hbm [shape: f32[128,128], index: 4, kind: input, shape index: {}]   ;;  %s832_s5 = inlined_call_operand.vmem [shape: f32[1,128], index: 5, kind: input, shape index: {}]   ;;  %s833_s6 = inlined_call_operand.hbm [shape: f32[8,128], index: 6, kind: output, shape index: {}]  }
   0x1   :  { %12 = vsyncpa [#allocation6], 0 }
   0x2   :  { %13 = vsyncpa [#allocation4], 0  ;;  %s682_s21 = smov [#allocation5]   ;;  %s683_s23 = smov [#allocation2]  }
   0x3   :  { %s33_s22 = sshll.u32 %s682_s21, 4  ;;  %s21_s24 = sshll.u32 %s683_s23, 4  ;;  %s34_s22 = int_to_ptr.vmem [resolvable:$true] %s33_s22  ;;  %s727_s24 = int_to_ptr.vmem [resolvable:$true] %s21_s24 }
   0x4   :  { %s588_s27 = scalar_lea.hbm %s829_s2, 2048 }
   0x5   :  { %p589_p0 = scmp.ne.s32.totalorder %s829_s2, %s588_s27  ;;  %p592_p1 = scmp.lt.u32.totalorder %s588_s27, %s829_s2 }
   0x7   :  { %p594_p2 = pnand %p592_p1, %p589_p0 }
   0x9   :  { %597 = shalt.err (!%p594_p2)
}
   0xa   :  { %s598_s8 = scalar_lea.vmem %s34_s22, 2048  ;;  %p603_p4 = scmp.lt.s32.totalorder %s34_s22, %s34_s22 }
   0xb   :  { %p599_p3 = scmp.ne.s32.totalorder %s34_s22, %s598_s8  ;;  %p604_p5 = scmp.lt.s32.totalorder %s598_s8, %s598_s8 }
   0xd   :  { %p605_p6 = por %p604_p5, %p603_p4 }
   0xf   :  { %p606_p7 = pnand %p605_p6, %p599_p3 }
  0x11   :  { %609 = shalt.err (!%p606_p7)
}
  0x12   :  { %s684_s9 = smov 128   ;;  %s685_s10 = smov 8  }
  0x13   :  { %39 = dma.hbm_to_vmem [thread:$0]  %s829_s2, 2048, %s34_s22, [#allocation6], %s684_s9, %s684_s9, %s685_s10  }
  0x14   :  { %s610_s15 = scalar_lea.hbm %s828_s1, 896 }
  0x15   :  { %p611_p8 = scmp.ne.s32.totalorder %s828_s1, %s610_s15  ;;  %p614_p9 = scmp.lt.u32.totalorder %s610_s15, %s828_s1 }
  0x17   :  { %p616_p10 = pnand %p614_p9, %p611_p8 }
  0x19   :  { %619 = shalt.err (!%p616_p10)
}
  0x1a   :  { %s620_s20 = scalar_lea.vmem %s727_s24, 896  ;;  %p625_p12 = scmp.lt.s32.totalorder %s727_s24, %s727_s24 }
  0x1b   :  { %p621_p11 = scmp.ne.s32.totalorder %s727_s24, %s620_s20  ;;  %p626_p13 = scmp.lt.s32.totalorder %s620_s20, %s620_s20 }
  0x1d   :  { %p627_p0 = por %p626_p13, %p625_p12 }
  0x1f   :  { %p628_p1 = pnand %p627_p0, %p621_p11 }
  0x21   :  { %631 = shalt.err (!%p628_p1)
}
  0x22   :  { %27 = dma.hbm_to_vmem [thread:$0]  %s828_s1, 896, %s727_s24, [#allocation3], %s684_s9, %s684_s9, %s685_s10  }
  0x23   :  { %s686_s22 = smov [#allocation7]   ;;  %s632_s27 = scalar_lea.hbm %s831_s4, 2048 }
  0x24   :  { %s47_s23 = sshll.u32 %s686_s22, 4  ;;  %p633_p2 = scmp.ne.s32.totalorder %s831_s4, %s632_s27  ;;  %s48_s23 = int_to_ptr.vmem [resolvable:$true] %s47_s23 }
  0x25   :  { %p636_p3 = scmp.lt.u32.totalorder %s632_s27, %s831_s4 }
  0x27   :  { %p638_p4 = pnand %p636_p3, %p633_p2 }
  0x29   :  { %641 = shalt.err (!%p638_p4)
}
  0x2a   :  { %s642_s8 = scalar_lea.vmem %s48_s23, 2048  ;;  %p647_p6 = scmp.lt.s32.totalorder %s48_s23, %s48_s23 }
  0x2b   :  { %p643_p5 = scmp.ne.s32.totalorder %s48_s23, %s642_s8  ;;  %p648_p7 = scmp.lt.s32.totalorder %s642_s8, %s642_s8 }
  0x2d   :  { %p649_p8 = por %p648_p7, %p647_p6 }
  0x2f   :  { %p650_p9 = pnand %p649_p8, %p643_p5 }
  0x31   :  { %653 = shalt.err (!%p650_p9)
}
  0x32   :  { %53 = dma.hbm_to_vmem [thread:$0]  %s831_s4, 2048, %s48_s23, [#allocation6], %s684_s9, %s684_s9, %s685_s10  }
  0x33   :  { %676 = dma.done.wait [#allocation3], 896  }
  0x34   :  { %677 = vsyncadd [#allocation3], 4294966400 }
  0x35   :  { %678 = dma.done.wait [#allocation6], 4096  }
  0x36   :  { %679 = vsyncadd [#allocation6], 4294963200  ;;  %v687_v0 = vmov 0   ;;  %v688_v1 = vmov 0.0|0.0   ;;  %v65_v2 = vld [vmem:[%s827_s0] sm:$0xff]  ;;  %v75_v4 = vld [vmem:[#allocation2 + $0x8] sm:$0xff]  ;;  %v66_v38 = vlaneseq }
  0x37   :  { %579 = vset.pattern.permute.xlu0 %v687_v0  ;;  %512 = vmatprep.subr.bf16.mxu0 %v688_v1  ;;  %v74_v3 = vld [vmem:[#allocation2] sm:$0xff]  ;;  %v76_v6 = vld [vmem:[#allocation2 + $0x10] sm:$0xff]  ;;  %v77_v7 = vld [vmem:[#allocation2 + $0x18] sm:$0xff]  ;;  %vm689_vm0 = vmmov 0   ;;  %v690_v8 = vmov 0.0   ;;  %vm85_vm1 = vcmask 1041408  }
  0x38   :  { %521 = vmatprep.subr.bf16.mxu1 %v688_v1  ;;  %69 = vperm.xlu0 %579, %v65_v2   ;;  %v513_v5 = vpack.c.bf16 %v75_v4, %v74_v3  ;;  %v516_v9 = vpack.c.bf16 %v77_v7, %v76_v6  ;;  %v159_v10 = vld [vmem:[#allocation5] sm:$0xff]  ;;  %v160_v11 = vld [vmem:[#allocation5 + $0x8] sm:$0xff]  ;;  %v161_v12 = vld [vmem:[#allocation5 + $0x10] sm:$0xff]  ;;  %v67_v39 = vand.u32 127, %v66_v38  ;;  %vm81_vm2 = vcmask 408576  }
  0x39   :  { %439 = vmatprep.mubr.msk.f32.mxu0 %vm689_vm0, %v690_v8  ;;  %474 = vmatprep.mubr.msk.f32.mxu1 %vm689_vm0, %v690_v8  ;;  %v78_v13 = vld [vmem:[#allocation2 + $0x20] sm:$0xff]  ;;  %v79_v14 = vld [vmem:[#allocation2 + $0x28] sm:$0xff]  ;;  %v522_v15 = vpack.c.bf16 %v160_v11, %v159_v10  ;;  %v162_v16 = vld [vmem:[#allocation5 + $0x18] sm:$0xff] }
  0x3a   :  { %514 = vmatpush3.bf16.msra.mxu0 %v513_v5  ;;  %v525_v17 = vpack.c.bf16 %v162_v16, %v161_v12  ;;  %v519_v18 = vpack.c.bf16 %v79_v14, %v78_v13  ;;  %v163_v19 = vld [vmem:[#allocation5 + $0x20] sm:$0xff]  ;;  %v164_v20 = vld [vmem:[#allocation5 + $0x28] sm:$0xff]  ;;  %v165_v22 = vld [vmem:[#allocation5 + $0x30] sm:$0xff] }
  0x3b   :  { %515 = vmatprep.subr.bf16.mxu0 %v688_v1  ;;  %523 = vmatpush3.bf16.msra.mxu1 %v522_v15  ;;  %v528_v21 = vpack.c.bf16 %v164_v20, %v163_v19  ;;  %v166_v23 = vld [vmem:[#allocation5 + $0x38] sm:$0xff]  ;;  %v167_v26 = vld [vmem:[#allocation5 + $0x40] sm:$0xff]  ;;  %v168_v27 = vld [vmem:[#allocation5 + $0x48] sm:$0xff] }
  0x3c   :  { %524 = vmatprep.subr.bf16.mxu1 %v688_v1  ;;  %v80_v24 = vld [vmem:[#allocation2 + $0x30] sm:$0x3]  ;;  %v531_v25 = vpack.c.bf16 %v166_v23, %v165_v22  ;;  %v534_v28 = vpack.c.bf16 %v168_v27, %v167_v26  ;;  %v169_v29 = vld [vmem:[#allocation5 + $0x50] sm:$0xff]  ;;  %v171_v32 = vld [vmem:[#allocation5 + $0x60] sm:$0xff] }
  0x3d   :  { %v170_v30 = vld [vmem:[#allocation5 + $0x58] sm:$0xff]  ;;  %v172_v33 = vld [vmem:[#allocation5 + $0x68] sm:$0xff]  ;;  %v173_v35 = vld [vmem:[#allocation5 + $0x70] sm:$0xff] }
  0x3e   :  { %517 = vmatpush3.bf16.msra.mxu0 %v516_v9  ;;  %v537_v31 = vpack.c.bf16 %v170_v30, %v169_v29  ;;  %v540_v34 = vpack.c.bf16 %v172_v33, %v171_v32  ;;  %v174_v36 = vld [vmem:[#allocation5 + $0x78] sm:$0xff]  ;;  %v259_v44 = vld [vmem:[#allocation7] sm:$0xff]  ;;  %v260_v45 = vld [vmem:[#allocation7 + $0x8] sm:$0xff] }
  0x3f   :  { %518 = vmatprep.subr.bf16.mxu0 %v688_v1  ;;  %526 = vmatpush3.bf16.msra.mxu1 %v525_v17  ;;  %v543_v37 = vpack.c.bf16 %v174_v36, %v173_v35  ;;  %v546_v46 = vpack.c.bf16 %v260_v45, %v259_v44  ;;  %v261_v47 = vld [vmem:[#allocation7 + $0x10] sm:$0xff]  ;;  %v262_v48 = vld [vmem:[#allocation7 + $0x18] sm:$0xff]  ;;  %v263_v50 = vld [vmem:[#allocation7 + $0x20] sm:$0xff] }
  0x40   :  { %527 = vmatprep.subr.bf16.mxu1 %v688_v1  ;;  %v549_v49 = vpack.c.bf16 %v262_v48, %v261_v47  ;;  %v264_v51 = vld [vmem:[#allocation7 + $0x28] sm:$0xff]  ;;  %v265_v53 = vld [vmem:[#allocation7 + $0x30] sm:$0xff]  ;;  %v266_v54 = vld [vmem:[#allocation7 + $0x38] sm:$0xff] }
  0x41   :  { %v552_v52 = vpack.c.bf16 %v264_v51, %v263_v50  ;;  %v555_v55 = vpack.c.bf16 %v266_v54, %v265_v53  ;;  %v267_v56 = vld [vmem:[#allocation7 + $0x40] sm:$0xff]  ;;  %v268_v57 = vld [vmem:[#allocation7 + $0x48] sm:$0xff]  ;;  %v269_v59 = vld [vmem:[#allocation7 + $0x50] sm:$0xff] }
  0x42   :  { %520 = vmatpush3.bf16.msra.mxu0 %v519_v18  ;;  %v558_v58 = vpack.c.bf16 %v268_v57, %v267_v56  ;;  %v270_v60 = vld [vmem:[#allocation7 + $0x58] sm:$0xff]  ;;  %v271_v62 = vld [vmem:[#allocation7 + $0x60] sm:$0xff]  ;;  %v272_v63 = vld [vmem:[#allocation7 + $0x68] sm:$0xff] }
  0x43   :  { %437 = vmatprep.subr.mxu0 %v690_v8  ;;  %529 = vmatpush3.bf16.msra.mxu1 %v528_v21  ;;  %v561_v61 = vpack.c.bf16 %v270_v60, %v269_v59  ;;  %v564_v0 = vpack.c.bf16 %v272_v63, %v271_v62  ;;  %v273_v2 = vld [vmem:[#allocation7 + $0x70] sm:$0xff]  ;;  %v274_v3 = vld [vmem:[#allocation7 + $0x78] sm:$0xff]  ;;  %v379_v5 = vld [vmem:[%s830_s3] ss:$0 sm:$0xff]  ;;  %s691_s3 = smov [#allocation8]  }
  0x44   :  { %530 = vmatprep.subr.bf16.mxu1 %v688_v1  ;;  %v567_v4 = vpack.c.bf16 %v274_v3, %v273_v2  ;;  %s366_s13 = sshll.u32 %s691_s3, 4  ;;  %s367_s13 = int_to_ptr.vmem [resolvable:$true] %s366_s13 }
  0x45   :  { %s654_s14 = scalar_lea.vmem %s367_s13, 128  ;;  %p659_p11 = scmp.lt.s32.totalorder %s367_s13, %s367_s13 }
  0x46   :  { %438 = vmatpush3.msk.msra.mxu0 %vm85_vm1, %v80_v24  ;;  %p655_p10 = scmp.ne.s32.totalorder %s367_s13, %s654_s14  ;;  %p660_p12 = scmp.lt.s32.totalorder %s654_s14, %s654_s14 }
  0x47   :  { %545 = vmatprep.subr.bf16.mxu0 %v688_v1  ;;  %532 = vmatpush3.bf16.msra.mxu1 %v531_v25 }
  0x48   :  { %533 = vmatprep.subr.bf16.mxu1 %v688_v1  ;;  %p661_p13 = por %p660_p12, %p659_p11 }
  0x4a   :  { %p662_p0 = pnand %p661_p13, %p655_p10 }
  0x4b   :  { %535 = vmatpush3.bf16.msra.mxu1 %v534_v28 }
  0x4c   :  { %536 = vmatprep.subr.bf16.mxu1 %v688_v1 }
  0x4f   :  { %538 = vmatpush3.bf16.msra.mxu1 %v537_v31 }
  0x50   :  { %539 = vmatprep.subr.bf16.mxu1 %v688_v1 }
  0x53   :  { %541 = vmatpush3.bf16.msra.mxu1 %v540_v34 }
  0x54   :  { %542 = vmatprep.subr.bf16.mxu1 %v688_v1 }
  0x57   :  { %544 = vmatpush3.bf16.msra.mxu1 %v543_v37 }
  0xb7   :  { %v70_v40 = vpop.permute.xlu0 %69 }
  0xb8   :  { %vm71_vm3 = vcmp.eq.s32.totalorder %v67_v39, %v70_v40 }
  0xb9   :  { %v376_v41 = vsel %vm71_vm3, 1.0, %v690_v8 }
  0xba   :  { %440 = vmatmul.mubr.msk.f32.vlgmr.msra.gmra.mrb[0].mxu0 %vm81_vm2, %v376_v41 }
  0xbb   :  { %509 = vmatprep.mubr.msk.f32.mxu0 %vm689_vm0, %v690_v8  ;;  %547 = vmatpush3.bf16.msra.mxu0 %v546_v46 }
  0xbc   :  { %548 = vmatprep.subr.bf16.mxu0 %v688_v1 }
  0xbf   :  { %550 = vmatpush3.bf16.msra.mxu0 %v549_v49 }
  0xc0   :  { %551 = vmatprep.subr.bf16.mxu0 %v688_v1 }
  0xc3   :  { %553 = vmatpush3.bf16.msra.mxu0 %v552_v52 }
  0xc4   :  { %554 = vmatprep.subr.bf16.mxu0 %v688_v1 }
  0xc7   :  { %556 = vmatpush3.bf16.msra.mxu0 %v555_v55 }
  0xc8   :  { %557 = vmatprep.subr.bf16.mxu0 %v688_v1 }
  0xcb   :  { %559 = vmatpush3.bf16.msra.mxu0 %v558_v58 }
  0xcc   :  { %560 = vmatprep.subr.bf16.mxu0 %v688_v1 }
  0xcf   :  { %562 = vmatpush3.bf16.msra.mxu0 %v561_v61 }
  0xd0   :  { %563 = vmatprep.subr.bf16.mxu0 %v688_v1 }
  0xd3   :  { %565 = vmatpush3.bf16.msra.mxu0 %v564_v0 }
  0xd4   :  { %566 = vmatprep.subr.bf16.mxu0 %v688_v1  ;;  %v381_v1 = vld [vmem:[%s832_s5] ss:$0 sm:$0xff] }
  0xd7   :  { %568 = vmatpush3.bf16.msra.mxu0 %v567_v4 }
 0x18d   :  { %v155_v42 = vpop.f32.mrb[0].mxu0 }
 0x18e   :  { %v441_v43 = vpop.f32.mrb[1].mxu0  ;;  %475 = vmatmul.mubr.f32.vlgmr.msra.gmra.mrb[0].mxu1 %v155_v42 }
 0x261   :  { %v248_v6 = vpop.f32.mrb[0].mxu1 }
 0x262   :  { %v249_v7 = vadd.f32 %v379_v5, %v248_v6  ;;  %v476_v8 = vpop.f32.mrb[1].mxu1 }
 0x264   :  { %v380_v9 = vmul.f32 -1.442695, %v249_v7 }
 0x266   :  { %580 = vpow2.f32 %v380_v9 }
 0x270   :  { %v581_v10 = vpop.eup %580 }
 0x271   :  { %v255_v11 = vadd.f32 1.0, %v581_v10 }
 0x273   :  { %582 = vrcp.f32 %v255_v11 }
 0x27d   :  { %v583_v12 = vpop.eup %582 }
 0x27e   :  { %v258_v13 = vmul.f32 %v583_v12, %v249_v7 }
 0x280   :  { %510 = vmatmul.mubr.f32.vlgmr.msra.gmra.mrb[2].mxu0 %v258_v13 }
 0x353   :  { %v348_v14 = vpop.f32.mrb[2].mxu0 }
 0x354   :  { %v349_v15 = vadd.f32 %v381_v1, %v348_v14  ;;  %v511_v16 = vpop.f32.mrb[3].mxu0 }
 0x356   :  { %v382_v17 = vmul.f32 -1.442695, %v349_v15 }
 0x358   :  { %584 = vpow2.f32 %v382_v17 }
 0x362   :  { %v585_v18 = vpop.eup %584 }
 0x363   :  { %v355_v19 = vadd.f32 1.0, %v585_v18 }
 0x365   :  { %586 = vrcp.f32 %v355_v19 }
 0x36f   :  { %v587_v20 = vpop.eup %586 }
 0x370   :  { %v358_v21 = vmul.f32 %v587_v20, %v349_v15 }
 0x372   :  { %359 = vst [vmem:[#allocation8] sm:$0xff] %v358_v21 }
 0x373   :  { %665 = shalt.err (!%p662_p0)
}
 0x374   :  { %s666_s16 = scalar_lea.hbm %s833_s6, 128 }
 0x375   :  { %p667_p1 = scmp.ne.s32.totalorder %s833_s6, %s666_s16  ;;  %p670_p2 = scmp.lt.u32.totalorder %s666_s16, %s833_s6 }
 0x377   :  { %p672_p3 = pnand %p670_p2, %p667_p1 }
 0x379   :  { %675 = shalt.err (!%p672_p3)
}
 0x37a   :  { %369 = dma.vmem_to_hbm [thread:$0]  %s367_s13, 128, %s833_s6, [#allocation4]  }
 0x37b   :  { %680 = dma.done.wait [#allocation4], 128  }
 0x37c   :  { %681 = vsyncadd [#allocation4], 4294967168 }
 0x37d   :  { %373 = vsyncpa [#allocation3], 1 }
 0x37e   :  { %374 = vsyncpa [#allocation6], 1 }
 0x37f   :  { %375 = vsyncpa [#allocation4], 1 }

</bundles_post_ra>
